<compile_context>
chip_gen: v6e
topology: v6e:2x2x1
jax: 0.10.0
libtpu: 0.0.40
codegen_flags: <defaults>
</compile_context>

<pallas_src>
import functools

import jax
import jax.numpy as jnp
from jax.experimental import pallas as pl
from jax.experimental.pallas import tpu as pltpu


def _linear_kernel(x_ref, w_ref, b_ref, o_ref):
    # o = x @ w + b : MXU matmul with f32 accumulation, VPU broadcast-add of the bias row.
    o_ref[...] = (
        jnp.dot(x_ref[...], w_ref[...], preferred_element_type=jnp.float32)
        + b_ref[...]
    ).astype(o_ref.dtype)


def linear_pallas(x2d, w, b, *, tile_rows=4096):
    """x2d: (M, K) f32, w: (K, N) f32, b: (N,) f32 -> (M, N) f32.

    Tiled over M (pipelined, 'parallel' axis).  If N < 128 and divides 128 and M is divisible by
    128//N, rows are packed so the kernel's output tile is lane-dense (last dim == 128).
    """
    M, K = x2d.shape
    N = w.shape[1]

    # ---- lane-dense row packing -------------------------------------------------------------
    pack = 128 // N if (N < 128 and 128 % N == 0 and M % (128 // N) == 0) else 1
    Mg, Kg, Ng = M // pack, K * pack, N * pack
    xg = x2d.reshape(Mg, Kg)                       # pure row-major reshape (no data movement)
    if pack > 1:
        wg = jnp.kron(jnp.eye(pack, dtype=w.dtype), w)     # block-diagonal (Kg, Ng), built once
        bg = jnp.tile(b, pack).reshape(1, Ng)
    else:
        wg = w
        bg = b.reshape(1, Ng)

    # ---- M tiling ---------------------------------------------------------------------------
    tile_mg = max(8, tile_rows // pack)            # multiple of 8 (e.g. 1024 packed = 4096 rows)
    if Mg <= tile_mg:
        tile_mg = Mg                               # full-dim block (exempt from 8-divisibility)
    grid = (pl.cdiv(Mg, tile_mg),)

    out = pl.pallas_call(
        _linear_kernel,
        out_shape=jax.ShapeDtypeStruct((Mg, Ng), x2d.dtype),
        grid=grid,
        in_specs=[
            pl.BlockSpec((tile_mg, Kg), lambda i: (i, 0)),   # streamed activation tiles
            pl.BlockSpec((Kg, Ng), lambda i: (0, 0)),        # weight: resident across grid
            pl.BlockSpec((1, Ng), lambda i: (0, 0)),         # bias:   resident across grid
        ],
        out_specs=pl.BlockSpec((tile_mg, Ng), lambda i: (i, 0)),
        compiler_params=pltpu.CompilerParams(
            dimension_semantics=("parallel",),
        ),
        cost_estimate=pl.CostEstimate(
            flops=2 * M * K * N,
            transcendentals=0,
            bytes_accessed=4 * (M * K + K * N + M * N),
        ),
    )(xg, wg, bg)
    return out.reshape(M, N)


def downsample_features(x_nchw, kernel):
    """Fused NCHW -> (b, h//k, w//k, k*k*c) feature layout in ONE transpose pass.

    Equivalent to: permute to NHWC then FeaturePooling.downsample_pooling (feature index runs
    over (h_inner, w_inner, c) in row-major order, matching the torch view/permute chain).
    """
    b, c, h, w = x_nchw.shape
    k = kernel
    x6 = x_nchw.reshape(b, c, h // k, k, w // k, k)
    feats = jnp.transpose(x6, (0, 2, 4, 3, 5, 1))          # (b, h//k, w//k, k, k, c)
    return feats.reshape(b, h // k, w // k, k * k * c)


def feature_pooling_forward(x_nchw, w_t, bias, pool_downsample_size):
    """FeaturePooling.forward for the pool_downsample_size > 1 branch.
    x_nchw: (bs, c, h, w);  w_t: (in_features, model_dim);  bias: (model_dim,)."""
    b, c, h, w = x_nchw.shape
    k = pool_downsample_size
    feats = downsample_features(x_nchw, k)                 # single fused layout pass
    M = b * (h // k) * (w // k)
    out2d = linear_pallas(feats.reshape(M, c * k * k), w_t, bias)
    return out2d.reshape(b, h // k, w // k, -1)


if __name__ == "__main__":
    # config: pool_with_resnet=False, pool_downsample_size=2, model_dim=32
    pool_k = 2
    model_dim = 32
    channels = 3                                   # in_features = 3 * pool_k**2 as in __init__
    in_features = channels * pool_k * pool_k

    key = jax.random.PRNGKey(0)
    kx, kw, kb = jax.random.split(key, 3)

    x = jax.random.normal(kx, (2, channels, 16, 16), jnp.float32)        # NCHW
    # nn.Linear weight is (out, in); pass its transpose (in, out) to the kernel.
    W = jax.random.normal(kw, (model_dim, in_features), jnp.float32) * 0.1
    bias = jax.random.normal(kb, (model_dim,), jnp.float32) * 0.1

    fwd = jax.jit(functools.partial(feature_pooling_forward,
                                    pool_downsample_size=pool_k))
    out = jax.block_until_ready(fwd(x, W.T, bias))

    # reference: exact port of the torch module's permute/view chain, in plain JAX
    def ref_downsample(x_nhwc, kernel):
        b, h, w, c = x_nhwc.shape
        y = x_nhwc.reshape(b, h, w // kernel, c * kernel)
        y = jnp.transpose(y, (0, 2, 1, 3))
        y = y.reshape(b, w // kernel, h // kernel, c * kernel * kernel)
        y = jnp.transpose(y, (0, 2, 1, 3))
        return y

    feats_ref = ref_downsample(jnp.transpose(x, (0, 2, 3, 1)), pool_k)
    ref = jnp.einsum("bhwk,ok->bhwo", feats_ref, W) + bias

    assert out.shape == (2, 8, 8, model_dim)
    assert jnp.allclose(out, ref, atol=1e-4, rtol=1e-4)

    print("KERNEL_OK")
</pallas_src>

<mosaic_0001>
module attributes {stable_mosaic.version = 11 : i64} {
  func.func @_linear_kernel(%arg0: i32, %arg1: memref<32x48xf32, #tpu.memory_space<vmem>>, %arg2: memref<48x128xf32, #tpu.memory_space<vmem>>, %arg3: memref<1x128xf32, #tpu.memory_space<vmem>>, %arg4: memref<32x128xf32, #tpu.memory_space<vmem>>) attributes {dimension_semantics = [#tpu.dimension_semantics<parallel>], iteration_bounds = array<i64: 1>, scalar_prefetch = 0 : i64, scratch_operands = 0 : i64, tpu.core_type = #tpu.core_type<tc>, window_params = [{transform_indices = @transform_0, window_bounds = array<i64: 32, 48>}, {pipeline_mode = #tpu.pipeline_mode<synchronous>, transform_indices = @transform_1, window_bounds = array<i64: 48, 128>}, {pipeline_mode = #tpu.pipeline_mode<synchronous>, transform_indices = @transform_2, window_bounds = array<i64: 1, 128>}, {transform_indices = @transform_3, window_bounds = array<i64: 32, 128>}]} {
    %c0 = arith.constant 0 : index
    %c0_0 = arith.constant 0 : index
    %0 = vector.load %arg1[%c0, %c0_0] : memref<32x48xf32, #tpu.memory_space<vmem>>, vector<32x48xf32>
    %c0_1 = arith.constant 0 : index
    %c0_2 = arith.constant 0 : index
    %1 = vector.load %arg2[%c0_1, %c0_2] : memref<48x128xf32, #tpu.memory_space<vmem>>, vector<48x128xf32>
    %cst = arith.constant dense<0.000000e+00> : vector<32x128xf32>
    %2 = tpu.matmul %0, %1, %cst {dimension_numbers = #tpu.dot_dimension_numbers<[1], [0], [0], [1], [0, 0, 1, 1], [], []>} : vector<32x48xf32>, vector<48x128xf32>, vector<32x128xf32> -> vector<32x128xf32>
    %c0_3 = arith.constant 0 : index
    %c0_4 = arith.constant 0 : index
    %3 = vector.load %arg3[%c0_3, %c0_4] : memref<1x128xf32, #tpu.memory_space<vmem>>, vector<1x128xf32>
    %4 = vector.broadcast %3 : vector<1x128xf32> to vector<32x128xf32>
    %5 = arith.addf %2, %4 : vector<32x128xf32>
    %c0_5 = arith.constant 0 : index
    %c0_6 = arith.constant 0 : index
    %6 = vector.load %arg4[%c0_5, %c0_6] : memref<32x128xf32, #tpu.memory_space<vmem>>, vector<32x128xf32>
    tpu.vector_store %arg4[%c0_5, %c0_6], %5 {strides = array<i32>} : memref<32x128xf32, #tpu.memory_space<vmem>>, vector<32x128xf32>,
    return
  }
  func.func @transform_0(%arg0: i32) -> (i32, i32) {
    %c0_i32 = arith.constant 0 : i32
    %c0_i32_0 = arith.constant 0 : i32
    return %arg0, %c0_i32 : i32, i32
  }
  func.func @transform_1(%arg0: i32) -> (i32, i32) {
    %c0_i32 = arith.constant 0 : i32
    %c0_i32_0 = arith.constant 0 : i32
    %c0_i32_1 = arith.constant 0 : i32
    return %c0_i32, %c0_i32_0 : i32, i32
  }
  func.func @transform_2(%arg0: i32) -> (i32, i32) {
    %c0_i32 = arith.constant 0 : i32
    %c0_i32_0 = arith.constant 0 : i32
    %c0_i32_1 = arith.constant 0 : i32
    return %c0_i32, %c0_i32_0 : i32, i32
  }
  func.func @transform_3(%arg0: i32) -> (i32, i32) {
    %c0_i32 = arith.constant 0 : i32
    %c0_i32_0 = arith.constant 0 : i32
    return %arg0, %c0_i32 : i32, i32
  }
}

</mosaic_0001>

<bundles_post_ra>
// kernel: tile.8
= control target key start
LH: loop header
LB: loop body
LE: loop exit
PB: predicated region body
PF: predicated region fallthrough
CT: control target
= control target key end

     0   :  { %s22_s0 = inlined_call_operand.vmem [shape: f32[32], index: 0, kind: input, shape index: {}]   ;;  %s23_s1 = inlined_call_operand.vmem [shape: f32[4,32], index: 1, kind: output, shape index: {}]  }
   0x1   :  { %v4_v0 = vld [vmem:[%s22_s0] ss:$0 sm:$0xff] }
   0x2   :  { %5 = vst [vmem:[%s23_s1] sm:$0xf] %v4_v0 }

// kernel: tile.9
= control target key start
LH: loop header
LB: loop body
LE: loop exit
PB: predicated region body
PF: predicated region fallthrough
CT: control target
= control target key end

     0   :  { %vm8_vm0 = vcmask 261120   ;;  %s40_s8 = smov 32   ;;  %s41_s9 = smov 64   ;;  %vm14_vm1 = vcmask 1048320   ;;  %vm20_vm2 = vcmask 785920   ;;  %vm26_vm3 = vcmask 523520   ;;  %s58_s0 = inlined_call_operand.vmem [shape: f32[4,32], index: 0, kind: input, shape index: {}]   ;;  %s59_s1 = inlined_call_operand.vmem [shape: f32[1,128], index: 1, kind: output, shape index: {}]  }
   0x1   :  { %v5_v0 = vld [vmem:[%s58_s0] sm:$0xf]  ;;  %s39_s0 = smov 96  }
   0x2   :  { %6 = vst [vmem:[#allocation1] sm:$0xf] %v5_v0 }
   0x9   :  { %v11_v1 = vld [vmem:[#allocation1 + $0x3] sm:$0x1]   ;;  %v23_v2 = vld [vmem:[#allocation1 + $0x1] sm:$0x1]   ;;  %v7_v3 = vld [vmem:[#allocation1] sm:$0x1]  }
   0xa   :  { %12 = vrot.lane.b32.xlu0 %v11_v1, %s39_s0  ;;  %24 = vrot.lane.b32.xlu1 %v23_v2, %s40_s8  ;;  %v17_v4 = vld [vmem:[#allocation1 + $0x2] sm:$0x1]   ;;  %9 = vst.msk [vmem:[#allocation0] sm:$0x1] %vm8_vm0, %v7_v3  }
   0xe   :  { %18 = vrot.lane.b32.xlu0 %v17_v4, %s41_s9 }
  0x7c   :  { %v13_v5 = vpop.permute.xlu0 %12   ;;  %v25_v6 = vpop.permute.xlu1 %24  }
  0x7d   :  { %15 = vst.msk [vmem:[#allocation0] sm:$0x1] %vm14_vm1, %v13_v5  }
  0x80   :  { %v19_v7 = vpop.permute.xlu0 %18  }
  0x81   :  { %21 = vst.msk [vmem:[#allocation0] sm:$0x1] %vm20_vm2, %v19_v7  }
  0x82   :  { %27 = vst.msk [vmem:[#allocation0] sm:$0x1] %vm26_vm3, %v25_v6  }
  0x89   :  { %v32_v8 = vld [vmem:[#allocation0] sm:$0x1] }
  0x8a   :  { %35 = vst [vmem:[%s59_s1] sm:$0x1] %v32_v8 }

// kernel: feature_pooling_forward.1
= control target key start
LH: loop header
LB: loop body
LE: loop exit
PB: predicated region body
PF: predicated region fallthrough
CT: control target
= control target key end

     0   :  { %vm31_vm0 = vcmask 392192   ;;  %s247_s1 = inlined_call_operand.vmem [shape: f32[48,128], index: 1, kind: input, shape index: {}]   ;;  %s248_s0 = inlined_call_operand.vmem [shape: f32[32,48], index: 0, kind: input, shape index: {}]   ;;  %s249_s2 = inlined_call_operand.vmem [shape: f32[1,128], index: 2, kind: input, shape index: {}]   ;;  %s250_s3 = inlined_call_operand.vmem [shape: f32[32,128], index: 3, kind: output, shape index: {}]  }
   0x1   :  { %v23_v0 = vld [vmem:[%s247_s1 + $0x28] sm:$0xff]  ;;  %v22_v1 = vld [vmem:[%s247_s1 + $0x20] sm:$0xff]  ;;  %v21_v2 = vld [vmem:[%s247_s1 + $0x18] sm:$0xff] }
   0x2   :  { %152 = vmatprep.subr.mxu0 %v23_v0  ;;  %170 = vmatprep.subr.mxu1 %v23_v0  ;;  %v20_v3 = vld [vmem:[%s247_s1 + $0x10] sm:$0xff]  ;;  %v19_v4 = vld [vmem:[%s247_s1 + $0x8] sm:$0xff]  ;;  %v18_v5 = vld [vmem:[%s247_s1] sm:$0xff] }
   0x3   :  { %153 = vmatpush3.msra.mxu0 %v23_v0  ;;  %176 = vmatpush3.msra.mxu1 %v23_v0  ;;  %v14_v6 = vld [vmem:[%s248_s0] sm:$0xff]  ;;  %v16_v7 = vld [vmem:[%s248_s0 + $0x10] sm:$0xff]  ;;  %v15_v8 = vld [vmem:[%s248_s0 + $0x8] sm:$0xff] }
   0x4   :  { %154 = vmatprep.subr.mxu0 %v22_v1  ;;  %171 = vmatprep.subr.mxu1 %v22_v1  ;;  %v17_v9 = vld [vmem:[%s248_s0 + $0x18] sm:$0xff]  ;;  %v137_v10 = vld [vmem:[%s249_s2] ss:$0 sm:$0xff] }
   0x5   :  { %155 = vmatpush3.msra.mxu0 %v22_v1  ;;  %177 = vmatpush3.msra.mxu1 %v22_v1 }
   0x6   :  { %156 = vmatprep.subr.mxu0 %v21_v2  ;;  %172 = vmatprep.subr.mxu1 %v21_v2 }
   0x7   :  { %157 = vmatpush3.msra.mxu0 %v21_v2  ;;  %178 = vmatpush3.msra.mxu1 %v21_v2 }
   0x8   :  { %158 = vmatprep.subr.mxu0 %v20_v3  ;;  %173 = vmatprep.subr.mxu1 %v20_v3 }
   0x9   :  { %159 = vmatpush3.msra.mxu0 %v20_v3  ;;  %179 = vmatpush3.msra.mxu1 %v20_v3 }
   0xa   :  { %160 = vmatprep.subr.mxu0 %v19_v4  ;;  %174 = vmatprep.subr.mxu1 %v19_v4 }
   0xb   :  { %161 = vmatpush3.msra.mxu0 %v19_v4  ;;  %180 = vmatpush3.msra.mxu1 %v19_v4 }
   0xc   :  { %162 = vmatprep.subr.mxu0 %v18_v5  ;;  %175 = vmatprep.subr.mxu1 %v18_v5 }
   0xd   :  { %163 = vmatpush3.msra.mxu0 %v18_v5  ;;  %181 = vmatpush3.msra.mxu1 %v18_v5 }
   0xe   :  { %164 = vmatprep.mubr.msk.f32.mxu0 %vm31_vm0, %v14_v6  ;;  %167 = vmatprep.mubr.msk.f32.mxu1 %vm31_vm0, %v16_v7 }
   0xf   :  { %165 = vmatmul.mubr.msk.f32.vlgmr.msra.gmra.mxu0 %vm31_vm0, %v15_v8  ;;  %168 = vmatmul.mubr.msk.f32.vlgmr.msra.gmra.mxu1 %vm31_vm0, %v17_v9 }
  0xcf   :  { %v166_v11 = vpop.f32.mrf.mxu0  ;;  %v169_v12 = vpop.f32.mrf.mxu1 }
  0xd0   :  { %v116_v13 = vadd.f32 %v166_v11, %v137_v10  ;;  %v126_v14 = vadd.f32 %v169_v12, %v137_v10 }
  0xd1   :  { %v110_v15 = vpop.f32.mrf.mxu0  ;;  %v120_v16 = vpop.f32.mrf.mxu1 }
  0xd2   :  { %130 = vst [vmem:[%s250_s3 + $0x8] sm:$0xff] %v116_v13  ;;  %132 = vst [vmem:[%s250_s3 + $0x18] sm:$0xff] %v126_v14  ;;  %v111_v17 = vadd.f32 %v137_v10, %v110_v15  ;;  %v121_v18 = vadd.f32 %v137_v10, %v120_v16 }
  0xd4   :  { %129 = vst [vmem:[%s250_s3] sm:$0xff] %v111_v17  ;;  %131 = vst [vmem:[%s250_s3 + $0x10] sm:$0xff] %v121_v18 }

</bundles_post_ra>
